<compile_context>
chip_gen: v7x
topology: tpu7x:2x2x1
jax: 0.10.0
libtpu: 0.0.40
codegen_flags: <defaults>
</compile_context>

<pallas_src>
import math

import jax
import jax.numpy as jnp
from jax.experimental import pallas as pl
from jax.experimental.pallas import tpu as pltpu


# ----------------------------------------------------------------------------
# Helpers
# ----------------------------------------------------------------------------
def _pad_to(n, m):
    return ((n + m - 1) // m) * m


def _gelu_exact(x):
    # PyTorch nn.GELU() default: exact erf form.
    return 0.5 * x * (1.0 + jax.lax.erf(x * (1.0 / math.sqrt(2.0))))


def _vmem_limit_bytes():
    """Per-generation VMEM budget (leave headroom below physical)."""
    kind = ""
    try:
        kind = jax.devices()[0].device_kind.lower()
    except Exception:  # pragma: no cover - defensive
        pass
    if "v7" in kind:
        return 48 * 1024 * 1024   # 64 MiB physical per TensorCore
    return 100 * 1024 * 1024      # v5e / v6e: 128 MiB physical


def _choose_tiling(M, Din, Dh_p, x_bytes, out_bytes, w_bytes, budget, tm_req):
    """Pick (tm, dh_tile). dh_tile=None means full weight residency."""
    Mp8 = _pad_to(max(M, 1), 8)

    if tm_req is not None:
        tm_req = max(8, (int(tm_req) // 8) * 8)         # enforce multiple of 8
        cands = [max(8, (min(tm_req, Mp8) // 8) * 8)]
    else:
        cands = [t for t in (1024, 512, 256, 128, 64, 32, 16, 8) if t <= Mp8]
        if not cands:
            cands = [8]

    def per_step(tm, dh, with_acc):
        xio = 2 * tm * Din * x_bytes + 2 * tm * Din * out_bytes  # dbl-buffered
        h = tm * dh * (4 + w_bytes)                   # f32 h + cast copy
        acc = tm * Din * 4 if with_acc else 0         # f32 accumulator scratch
        return xio + h + acc

    # 1) full weight residency (single-buffered constants).
    w_full = 2 * Din * Dh_p * w_bytes + (Dh_p + Din) * 4
    for tm in cands:
        if w_full + per_step(tm, Dh_p, False) <= budget:
            return tm, None

    # 2) stream the hidden dimension (double-buffered weight chunks).
    for tdh in (2048, 1024, 512, 256, 128):
        if tdh > Dh_p or Dh_p % tdh != 0:
            continue
        w_chunk = 2 * (2 * Din * tdh * w_bytes) + 2 * tdh * 4 + Din * 4
        for tm in cands:
            if w_chunk + per_step(tm, tdh, True) <= budget:
                return tm, tdh

    # Last resort: smallest tile; stream if there is more than one chunk.
    return cands[-1], (128 if Dh_p > 128 else None)


def _resident_spec(shape, index_map):
    """BlockSpec for a grid-invariant operand; single-buffered when supported."""
    if hasattr(pl, "Buffered"):
        try:
            return pl.BlockSpec(shape, index_map, pipeline_mode=pl.Buffered(1))
        except TypeError:
            pass
    return pl.BlockSpec(shape, index_map)


# ----------------------------------------------------------------------------
# Kernels
# ----------------------------------------------------------------------------
def _mlp_kernel(x_ref, w1_ref, b1_ref, w2_ref, b2_ref, o_ref):
    # x_ref:  (tm, Din)     tile of the fused (batch*seq) rows
    # w1_ref: (Din, Dh_p)   fc1 weight (transposed, Dh zero-padded), resident
    # b1_ref: (1, Dh_p)     fc1 bias (f32)
    # w2_ref: (Dh_p, Din)   fc2 weight (transposed), resident
    # b2_ref: (1, Din)      fc2 bias (f32)
    # o_ref:  (tm, Din)     output tile
    h = jnp.dot(x_ref[...], w1_ref[...], preferred_element_type=jnp.float32)
    h = _gelu_exact(h + b1_ref[...])
    y = jnp.dot(h.astype(w2_ref.dtype), w2_ref[...],
                preferred_element_type=jnp.float32)
    o_ref[...] = (y + b2_ref[...]).astype(o_ref.dtype)
    # TODO(synk): training-mode dropout (stochastic masking via
    # pltpu.prng_random_bits) is not implemented; dropout is identity at
    # inference as in the PyTorch eval() path.


def _mlp_kernel_dh(x_ref, w1_ref, b1_ref, w2_ref, b2_ref, o_ref, acc_ref):
    # Hidden-dim streaming path: grid = (M tiles, Dh chunks), axis 1 "arbitrary".
    # w1_ref: (Din, tdh); b1_ref: (1, tdh); w2_ref: (tdh, Din); acc_ref f32.
    k = pl.program_id(1)

    @pl.when(k == 0)
    def _():
        acc_ref[...] = jnp.zeros_like(acc_ref)

    h = jnp.dot(x_ref[...], w1_ref[...], preferred_element_type=jnp.float32)
    h = _gelu_exact(h + b1_ref[...])
    acc_ref[...] += jnp.dot(h.astype(w2_ref.dtype), w2_ref[...],
                            preferred_element_type=jnp.float32)

    @pl.when(k == pl.num_programs(1) - 1)
    def _():
        o_ref[...] = (acc_ref[...] + b2_ref[...]).astype(o_ref.dtype)


# ----------------------------------------------------------------------------
# Wrappers
# ----------------------------------------------------------------------------
def prepare_mlp_params(w1, b1, w2, b2, *, compute_dtype=jnp.bfloat16):
    """Precompute transposed/padded weights ONCE at model load.

    torch.nn.Linear layout: y = x @ W.T + b, so w1 is (Dh, Din), w2 is (Din, Dh).
    Only the hidden dim is padded (weight-only cost); the feature dim stays
    unpadded so activations never need an HBM pad/slice copy.
    """
    Dh, Din = w1.shape
    Dh_p = _pad_to(Dh, 128)
    wd = w1.dtype if compute_dtype is None else compute_dtype

    if Dh_p == Dh:
        w1t = w1.T.astype(wd)
        w2t = w2.T.astype(wd)
        b1p = b1.astype(jnp.float32).reshape(1, Dh)
    else:
        w1t = jnp.zeros((Din, Dh_p), wd).at[:, :Dh].set(w1.T.astype(wd))
        w2t = jnp.zeros((Dh_p, Din), wd).at[:Dh, :].set(w2.T.astype(wd))
        b1p = jnp.zeros((1, Dh_p), jnp.float32).at[0, :Dh].set(
            b1.astype(jnp.float32))
    b2p = b2.astype(jnp.float32).reshape(1, Din)

    return {"w1t": w1t, "b1p": b1p, "w2t": w2t, "b2p": b2p,
            "din": Din, "dh": Dh, "dh_p": Dh_p, "compute_dtype": wd}


def mlp_forward_prepared(x, params, *, tm=None, dh_tile=None, out_dtype=None):
    """x: (..., Din). Runs the fused fc1 -> GELU -> fc2 kernel."""
    Din = params["din"]
    assert x.shape[-1] == Din, "feature dim mismatch"
    orig_shape = x.shape
    M = 1
    for d in orig_shape[:-1]:
        M *= int(d)

    Dh_p = params["dh_p"]
    cdt = params["compute_dtype"]
    w1t, b1p, w2t, b2p = (params["w1t"], params["b1p"],
                          params["w2t"], params["b2p"])

    out_dtype = x.dtype if out_dtype is None else out_dtype
    x2 = x.reshape(M, Din)
    if x2.dtype != cdt:
        x2 = x2.astype(cdt)

    limit = _vmem_limit_bytes()
    budget = int(limit * 0.85)
    xb = jnp.dtype(cdt).itemsize
    wb = jnp.dtype(cdt).itemsize
    ob = jnp.dtype(out_dtype).itemsize

    tm_sel, tdh = _choose_tiling(M, Din, Dh_p, xb, ob, wb, budget, tm)
    if dh_tile is not None:
        assert Dh_p % dh_tile == 0 and dh_tile % 128 == 0
        tdh = dh_tile

    # Pad the fused row dim only when needed (common case: no copy).
    M_p = _pad_to(M, tm_sel)
    if M_p != M:
        x2 = jnp.pad(x2, ((0, M_p - M), (0, 0)))

    def run(use_buffered):
        const_spec = _resident_spec if use_buffered else pl.BlockSpec
        if tdh is None:
            # Full weight residency: 1-D grid over row tiles.
            cparams = pltpu.CompilerParams(
                dimension_semantics=("parallel",),
                vmem_limit_bytes=limit)
            return pl.pallas_call(
                _mlp_kernel,
                out_shape=jax.ShapeDtypeStruct((M_p, Din), out_dtype),
                grid_spec=pltpu.PrefetchScalarGridSpec(
                    num_scalar_prefetch=0,
                    grid=(M_p // tm_sel,),
                    in_specs=[
                        pl.BlockSpec((tm_sel, Din), lambda i: (i, 0)),
                        const_spec((Din, Dh_p), lambda i: (0, 0)),
                        const_spec((1, Dh_p), lambda i: (0, 0)),
                        const_spec((Dh_p, Din), lambda i: (0, 0)),
                        const_spec((1, Din), lambda i: (0, 0)),
                    ],
                    out_specs=pl.BlockSpec((tm_sel, Din), lambda i: (i, 0)),
                ),
                compiler_params=cparams,
            )(x2, w1t, b1p, w2t, b2p)
        else:
            # Hidden-dim streaming: (row tiles, Dh chunks) grid + f32 accumulator.
            cparams = pltpu.CompilerParams(
                dimension_semantics=("parallel", "arbitrary"),
                vmem_limit_bytes=limit)
            return pl.pallas_call(
                _mlp_kernel_dh,
                out_shape=jax.ShapeDtypeStruct((M_p, Din), out_dtype),
                grid_spec=pltpu.PrefetchScalarGridSpec(
                    num_scalar_prefetch=0,
                    grid=(M_p // tm_sel, Dh_p // tdh),
                    in_specs=[
                        pl.BlockSpec((tm_sel, Din), lambda i, k: (i, 0)),
                        pl.BlockSpec((Din, tdh), lambda i, k: (0, k)),
                        pl.BlockSpec((1, tdh), lambda i, k: (0, k)),
                        pl.BlockSpec((tdh, Din), lambda i, k: (k, 0)),
                        const_spec((1, Din), lambda i, k: (0, 0)),
                    ],
                    out_specs=pl.BlockSpec((tm_sel, Din), lambda i, k: (i, 0)),
                    scratch_shapes=[pltpu.VMEM((tm_sel, Din), jnp.float32)],
                ),
                compiler_params=cparams,
            )(x2, w1t, b1p, w2t, b2p)

    try:
        out = run(True)
    except Exception:
        # Fallback if single-buffered pipeline_mode is unsupported in this jax.
        out = run(False)

    if M_p != M:
        out = out[:M]
    return out.reshape(orig_shape)


def mlp_forward(x, w1, b1, w2, b2, *, compute_dtype=jnp.bfloat16, tm=None,
                dh_tile=None, out_dtype=None):
    # TODO(synk): for repeated inference calls, call prepare_mlp_params once at
    # model load and reuse it; this convenience wrapper re-prepares per call.
    params = prepare_mlp_params(w1, b1, w2, b2, compute_dtype=compute_dtype)
    return mlp_forward_prepared(x, params, tm=tm, dh_tile=dh_tile,
                                out_dtype=out_dtype)


# ----------------------------------------------------------------------------
# Reference + self-test
# ----------------------------------------------------------------------------
def _reference_forward(x, w1, b1, w2, b2):
    """Pure-JAX reference matching PyTorch Mlp.forward (exact-erf GELU)."""
    xf = x.astype(jnp.float32)
    h = jnp.einsum("...i,hi->...h", xf, w1.astype(jnp.float32)) + b1
    h = _gelu_exact(h)
    y = jnp.einsum("...h,ih->...i", h, w2.astype(jnp.float32)) + b2
    return y.astype(x.dtype)


if __name__ == "__main__":
    # Small shapes consistent with the module: batch=2, seq=16,
    # in_channel=32, mlp_channel=128.
    N, S, Din, Dh = 2, 16, 32, 128

    key = jax.random.PRNGKey(0)
    kx, k1, k2, kb1, kb2 = jax.random.split(key, 5)

    x = jax.random.normal(kx, (N, S, Din), dtype=jnp.float32)
    # Parameter init mirroring the module: xavier_uniform weights, tiny biases.
    lim1 = math.sqrt(6.0 / (Din + Dh))
    lim2 = math.sqrt(6.0 / (Dh + Din))
    w1 = jax.random.uniform(k1, (Dh, Din), jnp.float32, -lim1, lim1)
    w2 = jax.random.uniform(k2, (Din, Dh), jnp.float32, -lim2, lim2)
    b1 = jax.random.normal(kb1, (Dh,), dtype=jnp.float32) * 1e-6
    b2 = jax.random.normal(kb2, (Din,), dtype=jnp.float32) * 1e-6

    ref = _reference_forward(x, w1, b1, w2, b2)

    # 1) Exact f32 compute path (full weight residency).
    p32 = prepare_mlp_params(w1, b1, w2, b2, compute_dtype=jnp.float32)
    out32 = jax.block_until_ready(mlp_forward_prepared(x, p32))
    assert out32.shape == x.shape
    assert jnp.allclose(out32, ref, atol=1e-4, rtol=1e-4), (
        "f32 path mismatch, max abs diff "
        f"{float(jnp.max(jnp.abs(out32 - ref)))}")

    # 2) Default bf16 compute path (params prepared once, as at model load).
    pbf = prepare_mlp_params(w1, b1, w2, b2)  # bf16 default
    outbf = jax.block_until_ready(mlp_forward_prepared(x, pbf))
    assert jnp.allclose(outbf, ref, atol=5e-2, rtol=5e-2), (
        "bf16 path mismatch, max abs diff "
        f"{float(jnp.max(jnp.abs(outbf - ref)))}")

    # 3) Hidden-dim streaming fallback path (forced, Dh=256 -> 2 k-steps).
    Dh2 = 256
    lim1b = math.sqrt(6.0 / (Din + Dh2))
    w1b = jax.random.uniform(k1, (Dh2, Din), jnp.float32, -lim1b, lim1b)
    w2b = jax.random.uniform(k2, (Din, Dh2), jnp.float32, -lim1b, lim1b)
    b1b = jax.random.normal(kb1, (Dh2,), dtype=jnp.float32) * 1e-6
    refb = _reference_forward(x, w1b, b1b, w2b, b2)
    pb = prepare_mlp_params(w1b, b1b, w2b, b2, compute_dtype=jnp.float32)
    outdh = jax.block_until_ready(mlp_forward_prepared(x, pb, dh_tile=128))
    assert jnp.allclose(outdh, refb, atol=1e-4, rtol=1e-4), (
        "Dh-streaming path mismatch, max abs diff "
        f"{float(jnp.max(jnp.abs(outdh - refb)))}")

    # 4) Convenience wrapper (per-call prep), default bf16.
    outc = jax.block_until_ready(mlp_forward(x, w1, b1, w2, b2))
    assert jnp.allclose(outc, ref, atol=5e-2, rtol=5e-2)

    print("KERNEL_OK")
</pallas_src>

<mosaic_0001>
module attributes {stable_mosaic.version = 11 : i64} {
  func.func @_mlp_kernel(%arg0: i32, %arg1: memref<32x32xf32, #tpu.memory_space<vmem>>, %arg2: memref<32x128xf32, #tpu.memory_space<vmem>>, %arg3: memref<1x128xf32, #tpu.memory_space<vmem>>, %arg4: memref<128x32xf32, #tpu.memory_space<vmem>>, %arg5: memref<1x32xf32, #tpu.memory_space<vmem>>, %arg6: memref<32x32xf32, #tpu.memory_space<vmem>>) attributes {dimension_semantics = [#tpu.dimension_semantics<parallel>], iteration_bounds = array<i64: 1>, scalar_prefetch = 0 : i64, scratch_operands = 0 : i64, tpu.core_type = #tpu.core_type<tc>, window_params = [{transform_indices = @transform_0, window_bounds = array<i64: 32, 32>}, {pipeline_mode = #tpu.pipeline_mode<synchronous>, transform_indices = @transform_1, window_bounds = array<i64: 32, 128>}, {pipeline_mode = #tpu.pipeline_mode<synchronous>, transform_indices = @transform_2, window_bounds = array<i64: 1, 128>}, {pipeline_mode = #tpu.pipeline_mode<synchronous>, transform_indices = @transform_3, window_bounds = array<i64: 128, 32>}, {pipeline_mode = #tpu.pipeline_mode<synchronous>, transform_indices = @transform_4, window_bounds = array<i64: 1, 32>}, {transform_indices = @transform_5, window_bounds = array<i64: 32, 32>}]} {
    %c0 = arith.constant 0 : index
    %c0_0 = arith.constant 0 : index
    %0 = vector.load %arg1[%c0, %c0_0] : memref<32x32xf32, #tpu.memory_space<vmem>>, vector<32x32xf32>
    %c0_1 = arith.constant 0 : index
    %c0_2 = arith.constant 0 : index
    %1 = vector.load %arg2[%c0_1, %c0_2] : memref<32x128xf32, #tpu.memory_space<vmem>>, vector<32x128xf32>
    %cst = arith.constant dense<0.000000e+00> : vector<32x128xf32>
    %2 = tpu.matmul %0, %1, %cst {dimension_numbers = #tpu.dot_dimension_numbers<[1], [0], [0], [1], [0, 0, 1, 1], [], []>} : vector<32x32xf32>, vector<32x128xf32>, vector<32x128xf32> -> vector<32x128xf32>
    %c0_3 = arith.constant 0 : index
    %c0_4 = arith.constant 0 : index
    %3 = vector.load %arg3[%c0_3, %c0_4] : memref<1x128xf32, #tpu.memory_space<vmem>>, vector<1x128xf32>
    %4 = vector.broadcast %3 : vector<1x128xf32> to vector<32x128xf32>
    %5 = arith.addf %2, %4 : vector<32x128xf32>
    %cst_5 = arith.constant 5.000000e-01 : f32
    %6 = vector.broadcast %cst_5 : f32 to vector<32x128xf32>
    %7 = arith.mulf %6, %5 : vector<32x128xf32>
    %cst_6 = arith.constant 0.707106769 : f32
    %8 = vector.broadcast %cst_6 : f32 to vector<32x128xf32>
    %9 = arith.mulf %5, %8 : vector<32x128xf32>
    %10 = math.erf %9 : vector<32x128xf32>
    %cst_7 = arith.constant 1.000000e+00 : f32
    %11 = vector.broadcast %cst_7 : f32 to vector<32x128xf32>
    %12 = arith.addf %11, %10 : vector<32x128xf32>
    %13 = arith.mulf %7, %12 : vector<32x128xf32>
    %c0_8 = arith.constant 0 : index
    %c0_9 = arith.constant 0 : index
    %14 = vector.load %arg4[%c0_8, %c0_9] : memref<128x32xf32, #tpu.memory_space<vmem>>, vector<128x32xf32>
    %cst_10 = arith.constant dense<0.000000e+00> : vector<32x32xf32>
    %15 = tpu.matmul %13, %14, %cst_10 {dimension_numbers = #tpu.dot_dimension_numbers<[1], [0], [0], [1], [0, 0, 1, 1], [], []>} : vector<32x128xf32>, vector<128x32xf32>, vector<32x32xf32> -> vector<32x32xf32>
    %c0_11 = arith.constant 0 : index
    %c0_12 = arith.constant 0 : index
    %16 = vector.load %arg5[%c0_11, %c0_12] : memref<1x32xf32, #tpu.memory_space<vmem>>, vector<1x32xf32>
    %17 = vector.broadcast %16 : vector<1x32xf32> to vector<32x32xf32>
    %18 = arith.addf %15, %17 : vector<32x32xf32>
    %c0_13 = arith.constant 0 : index
    %c0_14 = arith.constant 0 : index
    %19 = vector.load %arg6[%c0_13, %c0_14] : memref<32x32xf32, #tpu.memory_space<vmem>>, vector<32x32xf32>
    tpu.vector_store %arg6[%c0_13, %c0_14], %18 {strides = array<i32>} : memref<32x32xf32, #tpu.memory_space<vmem>>, vector<32x32xf32>,
    return
  }
  func.func @transform_0(%arg0: i32) -> (i32, i32) {
    %c0_i32 = arith.constant 0 : i32
    %c0_i32_0 = arith.constant 0 : i32
    return %arg0, %c0_i32 : i32, i32
  }
  func.func @transform_1(%arg0: i32) -> (i32, i32) {
    %c0_i32 = arith.constant 0 : i32
    %c0_i32_0 = arith.constant 0 : i32
    %c0_i32_1 = arith.constant 0 : i32
    return %c0_i32, %c0_i32_0 : i32, i32
  }
  func.func @transform_2(%arg0: i32) -> (i32, i32) {
    %c0_i32 = arith.constant 0 : i32
    %c0_i32_0 = arith.constant 0 : i32
    %c0_i32_1 = arith.constant 0 : i32
    return %c0_i32, %c0_i32_0 : i32, i32
  }
  func.func @transform_3(%arg0: i32) -> (i32, i32) {
    %c0_i32 = arith.constant 0 : i32
    %c0_i32_0 = arith.constant 0 : i32
    %c0_i32_1 = arith.constant 0 : i32
    return %c0_i32, %c0_i32_0 : i32, i32
  }
  func.func @transform_4(%arg0: i32) -> (i32, i32) {
    %c0_i32 = arith.constant 0 : i32
    %c0_i32_0 = arith.constant 0 : i32
    %c0_i32_1 = arith.constant 0 : i32
    return %c0_i32, %c0_i32_0 : i32, i32
  }
  func.func @transform_5(%arg0: i32) -> (i32, i32) {
    %c0_i32 = arith.constant 0 : i32
    %c0_i32_0 = arith.constant 0 : i32
    return %arg0, %c0_i32 : i32, i32
  }
}

module attributes {stable_mosaic.version = 11 : i64} {
  func.func @_mlp_kernel(%arg0: i32, %arg1: memref<32x32xf32, #tpu.memory_space<vmem>>, %arg2: memref<32x128xf32, #tpu.memory_space<vmem>>, %arg3: memref<1x128xf32, #tpu.memory_space<vmem>>, %arg4: memref<128x32xf32, #tpu.memory_space<vmem>>, %arg5: memref<1x32xf32, #tpu.memory_space<vmem>>, %arg6: memref<32x32xf32, #tpu.memory_space<vmem>>) attributes {dimension_semantics = [#tpu.dimension_semantics<parallel>], iteration_bounds = array<i64: 1>, scalar_prefetch = 0 : i64, scratch_operands = 0 : i64, tpu.core_type = #tpu.core_type<tc>, window_params = [{transform_indices = @transform_0, window_bounds = array<i64: 32, 32>}, {pipeline_mode = #tpu.pipeline_mode<synchronous>, transform_indices = @transform_1, window_bounds = array<i64: 32, 128>}, {pipeline_mode = #tpu.pipeline_mode<synchronous>, transform_indices = @transform_2, window_bounds = array<i64: 1, 128>}, {pipeline_mode = #tpu.pipeline_mode<synchronous>, transform_indices = @transform_3, window_bounds = array<i64: 128, 32>}, {pipeline_mode = #tpu.pipeline_mode<synchronous>, transform_indices = @transform_4, window_bounds = array<i64: 1, 32>}, {transform_indices = @transform_5, window_bounds = array<i64: 32, 32>}]} {
    %c0 = arith.constant 0 : index
    %c0_0 = arith.constant 0 : index
    %0 = vector.load %arg1[%c0, %c0_0] : memref<32x32xf32, #tpu.memory_space<vmem>>, vector<32x32xf32>
    %c0_1 = arith.constant 0 : index
    %c0_2 = arith.constant 0 : index
    %1 = vector.load %arg2[%c0_1, %c0_2] : memref<32x128xf32, #tpu.memory_space<vmem>>, vector<32x128xf32>
    %cst = arith.constant dense<0.000000e+00> : vector<32x128xf32>
    %2 = tpu.matmul %0, %1, %cst {dimension_numbers = #tpu.dot_dimension_numbers<[1], [0], [0], [1], [0, 0, 1, 1], [], []>} : vector<32x32xf32>, vector<32x128xf32>, vector<32x128xf32> -> vector<32x128xf32>
    %c0_3 = arith.constant 0 : index
    %c0_4 = arith.constant 0 : index
    %3 = vector.load %arg3[%c0_3, %c0_4] : memref<1x128xf32, #tpu.memory_space<vmem>>, vector<1x128xf32>
    %4 = vector.broadcast %3 : vector<1x128xf32> to vector<32x128xf32>
    %5 = arith.addf %2, %4 : vector<32x128xf32>
    %cst_5 = arith.constant 5.000000e-01 : f32
    %6 = vector.broadcast %cst_5 : f32 to vector<32x128xf32>
    %7 = arith.mulf %6, %5 : vector<32x128xf32>
    %cst_6 = arith.constant 0.707106769 : f32
    %8 = vector.broadcast %cst_6 : f32 to vector<32x128xf32>
    %9 = arith.mulf %5, %8 : vector<32x128xf32>
    %10 = math.erf %9 : vector<32x128xf32>
    %cst_7 = arith.constant 1.000000e+00 : f32
    %11 = vector.broadcast %cst_7 : f32 to vector<32x128xf32>
    %12 = arith.addf %11, %10 : vector<32x128xf32>
    %13 = arith.mulf %7, %12 : vector<32x128xf32>
    %c0_8 = arith.constant 0 : index
    %c0_9 = arith.constant 0 : index
    %14 = vector.load %arg4[%c0_8, %c0_9] : memref<128x32xf32, #tpu.memory_space<vmem>>, vector<128x32xf32>
    %cst_10 = arith.constant dense<0.000000e+00> : vector<32x32xf32>
    %15 = tpu.matmul %13, %14, %cst_10 {dimension_numbers = #tpu.dot_dimension_numbers<[1], [0], [0], [1], [0, 0, 1, 1], [], []>} : vector<32x128xf32>, vector<128x32xf32>, vector<32x32xf32> -> vector<32x32xf32>
    %c0_11 = arith.constant 0 : index
    %c0_12 = arith.constant 0 : index
    %16 = vector.load %arg5[%c0_11, %c0_12] : memref<1x32xf32, #tpu.memory_space<vmem>>, vector<1x32xf32>
    %17 = vector.broadcast %16 : vector<1x32xf32> to vector<32x32xf32>
    %18 = arith.addf %15, %17 : vector<32x32xf32>
    %c0_13 = arith.constant 0 : index
    %c0_14 = arith.constant 0 : index
    %19 = vector.load %arg6[%c0_13, %c0_14] : memref<32x32xf32, #tpu.memory_space<vmem>>, vector<32x32xf32>
    tpu.vector_store %arg6[%c0_13, %c0_14], %18 {strides = array<i32>} : memref<32x32xf32, #tpu.memory_space<vmem>>, vector<32x32xf32>,
    return
  }
  func.func @transform_0(%arg0: i32) -> (i32, i32) {
    %c0_i32 = arith.constant 0 : i32
    %c0_i32_0 = arith.constant 0 : i32
    return %arg0, %c0_i32 : i32, i32
  }
  func.func @transform_1(%arg0: i32) -> (i32, i32) {
    %c0_i32 = arith.constant 0 : i32
    %c0_i32_0 = arith.constant 0 : i32
    %c0_i32_1 = arith.constant 0 : i32
    return %c0_i32, %c0_i32_0 : i32, i32
  }
  func.func @transform_2(%arg0: i32) -> (i32, i32) {
    %c0_i32 = arith.constant 0 : i32
    %c0_i32_0 = arith.constant 0 : i32
    %c0_i32_1 = arith.constant 0 : i32
    return %c0_i32, %c0_i32_0 : i32, i32
  }
  func.func @transform_3(%arg0: i32) -> (i32, i32) {
    %c0_i32 = arith.constant 0 : i32
    %c0_i32_0 = arith.constant 0 : i32
    %c0_i32_1 = arith.constant 0 : i32
    return %c0_i32, %c0_i32_0 : i32, i32
  }
  func.func @transform_4(%arg0: i32) -> (i32, i32) {
    %c0_i32 = arith.constant 0 : i32
    %c0_i32_0 = arith.constant 0 : i32
    %c0_i32_1 = arith.constant 0 : i32
    return %c0_i32, %c0_i32_0 : i32, i32
  }
  func.func @transform_5(%arg0: i32) -> (i32, i32) {
    %c0_i32 = arith.constant 0 : i32
    %c0_i32_0 = arith.constant 0 : i32
    return %arg0, %c0_i32 : i32, i32
  }
}

</mosaic_0001>

<bundles_post_ra>
// kernel: tpu_custom_call.1
= control target key start
LH: loop header
LB: loop body
LE: loop exit
PB: predicated region body
PF: predicated region fallthrough
CT: control target
= control target key end

     0   :  { %10 = vsyncpa [#allocation3], 0  ;;  %s768_s0 = inlined_call_operand.hbm [shape: f32[32,32], index: 0, kind: input, shape index: {}]   ;;  %s769_s1 = inlined_call_operand.hbm [shape: f32[32,128], index: 1, kind: input, shape index: {}]   ;;  %s770_s2 = inlined_call_operand.hbm [shape: f32[1,128], index: 2, kind: input, shape index: {}]   ;;  %s771_s3 = inlined_call_operand.hbm [shape: f32[128,32], index: 3, kind: input, shape index: {}]   ;;  %s772_s4 = inlined_call_operand.hbm [shape: f32[1,32], index: 4, kind: input, shape index: {}]   ;;  %s773_s5 = inlined_call_operand.hbm [shape: f32[32,32], index: 5, kind: output, shape index: {}]  }
   0x1   :  { %11 = vsyncpa [#allocation6], 0 }
   0x2   :  { %12 = vsyncpa [#allocation9], 0 }
   0x3   :  { %13 = vsyncpa [#allocation4], 0  ;;  %s631_s18 = smov [#allocation5]   ;;  %s632_s20 = smov [#allocation8]  }
   0x4   :  { %s31_s19 = sshll.u32 %s631_s18, 4  ;;  %s53_s21 = sshll.u32 %s632_s20, 4  ;;  %s32_s19 = int_to_ptr.vmem [resolvable:$true] %s31_s19  ;;  %s669_s21 = int_to_ptr.vmem [resolvable:$true] %s53_s21 }
   0x5   :  { %s491_s24 = scalar_lea.hbm %s769_s1, 512 }
   0x6   :  { %p492_p0 = scmp.ne.s32.totalorder %s769_s1, %s491_s24  ;;  %p495_p1 = scmp.lt.u32.totalorder %s491_s24, %s769_s1 }
   0x8   :  { %p497_p2 = pnand %p495_p1, %p492_p0 }
   0xa   :  { %500 = shalt.err (!%p497_p2)
}
   0xb   :  { %s501_s29 = scalar_lea.vmem %s32_s19, 512  ;;  %p506_p4 = scmp.lt.s32.totalorder %s32_s19, %s32_s19 }
   0xc   :  { %p502_p3 = scmp.ne.s32.totalorder %s32_s19, %s501_s29  ;;  %p507_p5 = scmp.lt.s32.totalorder %s501_s29, %s501_s29 }
   0xe   :  { %p508_p6 = por %p507_p5, %p506_p4 }
  0x10   :  { %p509_p7 = pnand %p508_p6, %p502_p3 }
  0x12   :  { %512 = shalt.err (!%p509_p7)
}
  0x13   :  { %s633_s30 = smov 128   ;;  %s634_s6 = smov 8  }
  0x14   :  { %37 = dma.hbm_to_vmem [thread:$0]  %s769_s1, 512, %s32_s19, [#allocation6], %s633_s30, %s633_s30, %s634_s6  }
  0x15   :  { %s513_s11 = scalar_lea.hbm %s771_s3, 2048 }
  0x16   :  { %p514_p8 = scmp.ne.s32.totalorder %s771_s3, %s513_s11  ;;  %p517_p9 = scmp.lt.u32.totalorder %s513_s11, %s771_s3 }
  0x18   :  { %p519_p10 = pnand %p517_p9, %p514_p8 }
  0x1a   :  { %522 = shalt.err (!%p519_p10)
}
  0x1b   :  { %s523_s16 = scalar_lea.vmem %s669_s21, 2048  ;;  %p528_p12 = scmp.lt.s32.totalorder %s669_s21, %s669_s21 }
  0x1c   :  { %p524_p11 = scmp.ne.s32.totalorder %s669_s21, %s523_s16  ;;  %p529_p13 = scmp.lt.s32.totalorder %s523_s16, %s523_s16 }
  0x1e   :  { %p530_p0 = por %p529_p13, %p528_p12 }
  0x20   :  { %p531_p1 = pnand %p530_p0, %p524_p11 }
  0x22   :  { %534 = shalt.err (!%p531_p1)
}
  0x23   :  { %59 = dma.hbm_to_vmem [thread:$0]  %s771_s3, 2048, %s669_s21, [#allocation9], %s633_s30, %s633_s30, %s634_s6  }
  0x24   :  { %s635_s18 = smov [#allocation2]   ;;  %s636_s20 = smov [#allocation7]  }
  0x25   :  { %s19_s19 = sshll.u32 %s635_s18, 4  ;;  %s44_s22 = sshll.u32 %s636_s20, 4  ;;  %s20_s19 = int_to_ptr.vmem [resolvable:$true] %s19_s19  ;;  %s45_s22 = int_to_ptr.vmem [resolvable:$true] %s44_s22 }
  0x26   :  { %s535_s25 = scalar_lea.hbm %s768_s0, 512 }
  0x27   :  { %p536_p2 = scmp.ne.s32.totalorder %s768_s0, %s535_s25  ;;  %p539_p3 = scmp.lt.u32.totalorder %s535_s25, %s768_s0 }
  0x29   :  { %p541_p4 = pnand %p539_p3, %p536_p2 }
  0x2b   :  { %544 = shalt.err (!%p541_p4)
}
  0x2c   :  { %s545_s3 = scalar_lea.vmem %s20_s19, 512  ;;  %p550_p6 = scmp.lt.s32.totalorder %s20_s19, %s20_s19 }
  0x2d   :  { %p546_p5 = scmp.ne.s32.totalorder %s20_s19, %s545_s3  ;;  %p551_p7 = scmp.lt.s32.totalorder %s545_s3, %s545_s3 }
  0x2f   :  { %p552_p8 = por %p551_p7, %p550_p6 }
  0x31   :  { %p553_p9 = pnand %p552_p8, %p546_p5 }
  0x33   :  { %556 = shalt.err (!%p553_p9)
}
  0x34   :  { %25 = dma.hbm_to_vmem [thread:$0]  %s768_s0, 512, %s20_s19, [#allocation3], %s633_s30, %s633_s30, %s634_s6  }
  0x35   :  { %s557_s10 = scalar_lea.hbm %s770_s2, 16 }
  0x36   :  { %p558_p10 = scmp.ne.s32.totalorder %s770_s2, %s557_s10  ;;  %p561_p11 = scmp.lt.u32.totalorder %s557_s10, %s770_s2 }
  0x38   :  { %p563_p12 = pnand %p561_p11, %p558_p10 }
  0x3a   :  { %566 = shalt.err (!%p563_p12)
}
  0x3b   :  { %s567_s15 = scalar_lea.vmem %s45_s22, 16  ;;  %s571_s16 = scalar_lea.vmem %s45_s22, 32 }
  0x3c   :  { %p568_p13 = scmp.ne.s32.totalorder %s45_s22, %s567_s15  ;;  %p572_p0 = scmp.lt.s32.totalorder %s45_s22, %s45_s22 }
  0x3d   :  { %p573_p1 = scmp.lt.s32.totalorder %s571_s16, %s567_s15 }
  0x3f   :  { %p574_p2 = por %p573_p1, %p572_p0 }
  0x41   :  { %p575_p3 = pnand %p574_p2, %p568_p13 }
  0x43   :  { %578 = shalt.err (!%p575_p3)
}
  0x44   :  { %47 = dma.hbm_to_vmem [thread:$0]  %s770_s2, 16, %s45_s22, [#allocation6]  }
  0x45   :  { %s637_s17 = smov [#allocation10]   ;;  %s579_s23 = scalar_lea.hbm %s772_s4, 16 }
  0x46   :  { %s66_s18 = sshll.u32 %s637_s17, 4  ;;  %p580_p4 = scmp.ne.s32.totalorder %s772_s4, %s579_s23  ;;  %s67_s18 = int_to_ptr.vmem [resolvable:$true] %s66_s18 }
  0x47   :  { %p583_p5 = scmp.lt.u32.totalorder %s579_s23, %s772_s4 }
  0x49   :  { %p585_p6 = pnand %p583_p5, %p580_p4 }
  0x4b   :  { %588 = shalt.err (!%p585_p6)
}
  0x4c   :  { %s589_s28 = scalar_lea.vmem %s67_s18, 16  ;;  %s593_s2 = scalar_lea.vmem %s67_s18, 32 }
  0x4d   :  { %p590_p7 = scmp.ne.s32.totalorder %s67_s18, %s589_s28  ;;  %p594_p8 = scmp.lt.s32.totalorder %s67_s18, %s67_s18 }
  0x4e   :  { %p595_p9 = scmp.lt.s32.totalorder %s593_s2, %s589_s28 }
  0x50   :  { %p596_p10 = por %p595_p9, %p594_p8 }
  0x52   :  { %p597_p11 = pnand %p596_p10, %p590_p7 }
  0x54   :  { %600 = shalt.err (!%p597_p11)
}
  0x55   :  { %69 = dma.hbm_to_vmem [thread:$0]  %s772_s4, 16, %s67_s18, [#allocation9]  }
  0x56   :  { %623 = dma.done.wait [#allocation3], 512  }
  0x57   :  { %624 = vsyncadd [#allocation3], 4294966784 }
  0x58   :  { %625 = dma.done.wait [#allocation6], 528  }
  0x59   :  { %626 = vsyncadd [#allocation6], 4294966768 }
  0x5a   :  { %627 = dma.done.wait [#allocation9], 2064  }
  0x5b   :  { %628 = vsyncadd [#allocation9], 4294965232  ;;  %vm100_vm0 = vcmask 261120   ;;  %v89_v0 = vld [vmem:[#allocation5] sm:$0xff]  ;;  %v90_v1 = vld [vmem:[#allocation5 + $0x8] sm:$0xff]  ;;  %s638_s4 = smov [#allocation11]  }
  0x5c   :  { %v91_v2 = vld [vmem:[#allocation5 + $0x10] sm:$0xff]  ;;  %v435_v3 = vpack.c.bf16 %v90_v1, %v89_v0  ;;  %v92_v4 = vld [vmem:[#allocation5 + $0x18] sm:$0xff]  ;;  %v85_v5 = vld [vmem:[#allocation2] sm:$0xff]  ;;  %s335_s3 = sshll.u32 %s638_s4, 4  ;;  %s336_s3 = int_to_ptr.vmem [resolvable:$true] %s335_s3 }
  0x5d   :  { %v439_v6 = vpack.c.bf16 %v92_v4, %v91_v2  ;;  %391 = vmatprep.mubr.msk.f32.mxu0 %vm100_vm0, %v85_v5  ;;  %v218_v7 = vld [vmem:[#allocation8] sm:$0xff]  ;;  %v219_v8 = vld [vmem:[#allocation8 + $0x8] sm:$0xff]  ;;  %v220_v9 = vld [vmem:[#allocation8 + $0x10] sm:$0xff]  ;;  %s601_s21 = scalar_lea.vmem %s336_s3, 512  ;;  %p606_p13 = scmp.lt.s32.totalorder %s336_s3, %s336_s3 }
  0x5e   :  { %436 = vmatprep.subr.bf16.mxu0 %v435_v3  ;;  %v221_v10 = vld [vmem:[#allocation8 + $0x18] sm:$0xff]  ;;  %v443_v11 = vpack.c.bf16 %v219_v8, %v218_v7  ;;  %v222_v13 = vld [vmem:[#allocation8 + $0x20] sm:$0xff]  ;;  %v223_v14 = vld [vmem:[#allocation8 + $0x28] sm:$0xff]  ;;  %p602_p12 = scmp.ne.s32.totalorder %s336_s3, %s601_s21  ;;  %p607_p0 = scmp.lt.s32.totalorder %s601_s21, %s601_s21 }
  0x5f   :  { %438 = vmatpush3.bf16.msra.mxu0 %v435_v3  ;;  %v447_v12 = vpack.c.bf16 %v221_v10, %v220_v9  ;;  %v86_v15 = vld [vmem:[#allocation2 + $0x8] sm:$0xff]  ;;  %v451_v16 = vpack.c.bf16 %v223_v14, %v222_v13  ;;  %v87_v17 = vld [vmem:[#allocation2 + $0x10] sm:$0xff]  ;;  %v88_v18 = vld [vmem:[#allocation2 + $0x18] sm:$0xff] }
  0x60   :  { %440 = vmatprep.subr.bf16.mxu0 %v439_v6  ;;  %444 = vmatprep.subr.bf16.mxu1 %v443_v11  ;;  %v224_v19 = vld [vmem:[#allocation8 + $0x30] sm:$0xff]  ;;  %v225_v20 = vld [vmem:[#allocation8 + $0x38] sm:$0xff]  ;;  %v226_v22 = vld [vmem:[#allocation8 + $0x40] sm:$0xff]  ;;  %p608_p1 = por %p607_p0, %p606_p13 }
  0x61   :  { %446 = vmatpush3.bf16.msra.mxu1 %v443_v11  ;;  %v455_v21 = vpack.c.bf16 %v225_v20, %v224_v19  ;;  %v227_v23 = vld [vmem:[#allocation8 + $0x48] sm:$0xff]  ;;  %v228_v25 = vld [vmem:[#allocation8 + $0x50] sm:$0xff]  ;;  %v229_v26 = vld [vmem:[#allocation8 + $0x58] sm:$0xff] }
  0x62   :  { %448 = vmatprep.subr.bf16.mxu1 %v447_v12  ;;  %v459_v24 = vpack.c.bf16 %v227_v23, %v226_v22  ;;  %v463_v27 = vpack.c.bf16 %v229_v26, %v228_v25  ;;  %v230_v28 = vld [vmem:[#allocation8 + $0x60] sm:$0xff]  ;;  %v231_v29 = vld [vmem:[#allocation8 + $0x68] sm:$0xff]  ;;  %v232_v31 = vld [vmem:[#allocation8 + $0x70] sm:$0xff]  ;;  %p609_p2 = pnand %p608_p1, %p602_p12 }
  0x63   :  { %442 = vmatpush3.bf16.msra.mxu0 %v439_v6  ;;  %v467_v30 = vpack.c.bf16 %v231_v29, %v230_v28  ;;  %v233_v32 = vld [vmem:[#allocation8 + $0x78] sm:$0xff]  ;;  %v354_v63 = vld [vmem:[#allocation10] ss:$0 sm:$0xff] }
  0x64   :  { %v471_v33 = vpack.c.bf16 %v233_v32, %v232_v31  ;;  %v349_v34 = vld [vmem:[#allocation7] ss:$0 sm:$0xff] }
  0x65   :  { %450 = vmatpush3.bf16.msra.mxu1 %v447_v12 }
  0x66   :  { %392 = vmatmul.mubr.msk.f32.vlgmr.msra.gmra.mrb[0].mxu0 %vm100_vm0, %v86_v15  ;;  %452 = vmatprep.subr.bf16.mxu1 %v451_v16 }
  0x67   :  { %394 = vmatprep.mubr.msk.f32.mxu0 %vm100_vm0, %v87_v17 }
  0x69   :  { %454 = vmatpush3.bf16.msra.mxu1 %v451_v16 }
  0x6a   :  { %395 = vmatmul.mubr.msk.f32.gmra.mrb[2].mxu0 %vm100_vm0, %v88_v18  ;;  %456 = vmatprep.subr.bf16.mxu1 %v455_v21 }
  0x6d   :  { %458 = vmatpush3.bf16.msra.mxu1 %v455_v21 }
  0x6e   :  { %460 = vmatprep.subr.bf16.mxu1 %v459_v24 }
  0x71   :  { %462 = vmatpush3.bf16.msra.mxu1 %v459_v24 }
  0x72   :  { %464 = vmatprep.subr.bf16.mxu1 %v463_v27 }
  0x75   :  { %466 = vmatpush3.bf16.msra.mxu1 %v463_v27 }
  0x76   :  { %468 = vmatprep.subr.bf16.mxu1 %v467_v30 }
  0x79   :  { %470 = vmatpush3.bf16.msra.mxu1 %v467_v30 }
  0x7a   :  { %472 = vmatprep.subr.bf16.mxu1 %v471_v33 }
  0x7d   :  { %474 = vmatpush3.bf16.msra.mxu1 %v471_v33 }
 0x139   :  { %v393_v35 = vpop.f32.mrb[0].mxu0 }
 0x13a   :  { %v185_v36 = vadd.f32 %v393_v35, %v349_v34  ;;  %v179_v37 = vpop.f32.mrb[1].mxu0 }
 0x13b   :  { %v180_v38 = vadd.f32 %v349_v34, %v179_v37 }
 0x13c   :  { %v203_v39 = vmul.f32 0.70710677, %v185_v36  ;;  %v199_v52 = vmul.f32 0.5, %v185_v36 }
 0x13d   :  { %v202_v40 = vmul.f32 0.70710677, %v180_v38  ;;  %v396_v41 = vpop.f32.mrb[2].mxu0  ;;  %v198_v50 = vmul.f32 0.5, %v180_v38 }
 0x13e   :  { %483 = verf.f32 %v203_v39  ;;  %v195_v42 = vadd.f32 %v396_v41, %v349_v34  ;;  %v189_v43 = vpop.f32.mrb[3].mxu0 }
 0x13f   :  { %485 = verf.f32 %v202_v40  ;;  %v190_v44 = vadd.f32 %v349_v34, %v189_v43 }
 0x140   :  { %v205_v45 = vmul.f32 0.70710677, %v195_v42  ;;  %v201_v60 = vmul.f32 0.5, %v195_v42 }
 0x141   :  { %v204_v46 = vmul.f32 0.70710677, %v190_v44  ;;  %v200_v58 = vmul.f32 0.5, %v190_v44 }
 0x142   :  { %487 = verf.f32 %v205_v45 }
 0x143   :  { %489 = verf.f32 %v204_v46 }
 0x148   :  { %v484_v47 = vpop.eup %483 }
 0x149   :  { %v486_v48 = vpop.eup %485  ;;  %v211_v49 = vadd.f32 1.0, %v484_v47 }
 0x14a   :  { %v210_v51 = vadd.f32 1.0, %v486_v48 }
 0x14b   :  { %v215_v57 = vmul.f32 %v211_v49, %v199_v52 }
 0x14c   :  { %v488_v53 = vpop.eup %487  ;;  %v214_v54 = vmul.f32 %v210_v51, %v198_v50 }
 0x14d   :  { %v490_v55 = vpop.eup %489  ;;  %v213_v56 = vadd.f32 1.0, %v488_v53 }
 0x14e   :  { %v212_v59 = vadd.f32 1.0, %v490_v55  ;;  %429 = vmatprep.mubr.f32.mxu1 %v214_v54 }
 0x14f   :  { %430 = vmatmul.mubr.f32.vlgmr.msra.gmra.mrb[0].mxu1 %v215_v57  ;;  %v217_v62 = vmul.f32 %v213_v56, %v201_v60 }
 0x150   :  { %v216_v61 = vmul.f32 %v212_v59, %v200_v58 }
 0x152   :  { %432 = vmatprep.mubr.f32.mxu1 %v216_v61 }
 0x153   :  { %433 = vmatmul.mubr.f32.gmra.mrb[2].mxu1 %v217_v62 }
 0x222   :  { %v431_v0 = vpop.f32.mrb[0].mxu1 }
 0x223   :  { %v313_v1 = vadd.f32 %v431_v0, %v354_v63  ;;  %v307_v2 = vpop.f32.mrb[1].mxu1 }
 0x224   :  { %v308_v3 = vadd.f32 %v354_v63, %v307_v2 }
 0x225   :  { %327 = vst.msk [vmem:[#allocation11 + $0x8] sm:$0xff] %vm100_vm0, %v313_v1 }
 0x226   :  { %326 = vst.msk [vmem:[#allocation11] sm:$0xff] %vm100_vm0, %v308_v3  ;;  %v434_v4 = vpop.f32.mrb[2].mxu1 }
 0x227   :  { %v323_v5 = vadd.f32 %v434_v4, %v354_v63  ;;  %v317_v6 = vpop.f32.mrb[3].mxu1 }
 0x228   :  { %v318_v7 = vadd.f32 %v354_v63, %v317_v6 }
 0x229   :  { %329 = vst.msk [vmem:[#allocation11 + $0x18] sm:$0xff] %vm100_vm0, %v323_v5 }
 0x22a   :  { %328 = vst.msk [vmem:[#allocation11 + $0x10] sm:$0xff] %vm100_vm0, %v318_v7 }
 0x22b   :  { %612 = shalt.err (!%p609_p2)
}
 0x22c   :  { %s613_s9 = scalar_lea.hbm %s773_s5, 512 }
 0x22d   :  { %p614_p3 = scmp.ne.s32.totalorder %s773_s5, %s613_s9  ;;  %p617_p4 = scmp.lt.u32.totalorder %s613_s9, %s773_s5 }
 0x22f   :  { %p619_p5 = pnand %p617_p4, %p614_p3 }
 0x231   :  { %622 = shalt.err (!%p619_p5)
}
 0x232   :  { %341 = dma.vmem_to_hbm [thread:$0]  %s336_s3, 512, %s773_s5, [#allocation4], %s633_s30, %s633_s30, %s634_s6  }
 0x233   :  { %629 = dma.done.wait [#allocation4], 512  }
 0x234   :  { %630 = vsyncadd [#allocation4], 4294966784 }
 0x235   :  { %345 = vsyncpa [#allocation3], 1 }
 0x236   :  { %346 = vsyncpa [#allocation6], 1 }
 0x237   :  { %347 = vsyncpa [#allocation9], 1 }
 0x238   :  { %348 = vsyncpa [#allocation4], 1 }

// kernel: tpu_custom_call.1
= control target key start
LH: loop header
LB: loop body
LE: loop exit
PB: predicated region body
PF: predicated region fallthrough
CT: control target
= control target key end

     0   :  { %10 = vsyncpa [#allocation3], 0  ;;  %s768_s0 = inlined_call_operand.hbm [shape: f32[32,32], index: 0, kind: input, shape index: {}]   ;;  %s769_s1 = inlined_call_operand.hbm [shape: f32[32,128], index: 1, kind: input, shape index: {}]   ;;  %s770_s2 = inlined_call_operand.hbm [shape: f32[1,128], index: 2, kind: input, shape index: {}]   ;;  %s771_s3 = inlined_call_operand.hbm [shape: f32[128,32], index: 3, kind: input, shape index: {}]   ;;  %s772_s4 = inlined_call_operand.hbm [shape: f32[1,32], index: 4, kind: input, shape index: {}]   ;;  %s773_s5 = inlined_call_operand.hbm [shape: f32[32,32], index: 5, kind: output, shape index: {}]  }
   0x1   :  { %11 = vsyncpa [#allocation6], 0 }
   0x2   :  { %12 = vsyncpa [#allocation9], 0 }
   0x3   :  { %13 = vsyncpa [#allocation4], 0  ;;  %s631_s18 = smov [#allocation5]   ;;  %s632_s20 = smov [#allocation8]  }
   0x4   :  { %s31_s19 = sshll.u32 %s631_s18, 4  ;;  %s53_s21 = sshll.u32 %s632_s20, 4  ;;  %s32_s19 = int_to_ptr.vmem [resolvable:$true] %s31_s19  ;;  %s669_s21 = int_to_ptr.vmem [resolvable:$true] %s53_s21 }
   0x5   :  { %s491_s24 = scalar_lea.hbm %s769_s1, 512 }
   0x6   :  { %p492_p0 = scmp.ne.s32.totalorder %s769_s1, %s491_s24  ;;  %p495_p1 = scmp.lt.u32.totalorder %s491_s24, %s769_s1 }
   0x8   :  { %p497_p2 = pnand %p495_p1, %p492_p0 }
   0xa   :  { %500 = shalt.err (!%p497_p2)
}
   0xb   :  { %s501_s29 = scalar_lea.vmem %s32_s19, 512  ;;  %p506_p4 = scmp.lt.s32.totalorder %s32_s19, %s32_s19 }
   0xc   :  { %p502_p3 = scmp.ne.s32.totalorder %s32_s19, %s501_s29  ;;  %p507_p5 = scmp.lt.s32.totalorder %s501_s29, %s501_s29 }
   0xe   :  { %p508_p6 = por %p507_p5, %p506_p4 }
  0x10   :  { %p509_p7 = pnand %p508_p6, %p502_p3 }
  0x12   :  { %512 = shalt.err (!%p509_p7)
}
  0x13   :  { %s633_s30 = smov 128   ;;  %s634_s6 = smov 8  }
  0x14   :  { %37 = dma.hbm_to_vmem [thread:$0]  %s769_s1, 512, %s32_s19, [#allocation6], %s633_s30, %s633_s30, %s634_s6  }
  0x15   :  { %s513_s11 = scalar_lea.hbm %s771_s3, 2048 }
  0x16   :  { %p514_p8 = scmp.ne.s32.totalorder %s771_s3, %s513_s11  ;;  %p517_p9 = scmp.lt.u32.totalorder %s513_s11, %s771_s3 }
  0x18   :  { %p519_p10 = pnand %p517_p9, %p514_p8 }
  0x1a   :  { %522 = shalt.err (!%p519_p10)
}
  0x1b   :  { %s523_s16 = scalar_lea.vmem %s669_s21, 2048  ;;  %p528_p12 = scmp.lt.s32.totalorder %s669_s21, %s669_s21 }
  0x1c   :  { %p524_p11 = scmp.ne.s32.totalorder %s669_s21, %s523_s16  ;;  %p529_p13 = scmp.lt.s32.totalorder %s523_s16, %s523_s16 }
  0x1e   :  { %p530_p0 = por %p529_p13, %p528_p12 }
  0x20   :  { %p531_p1 = pnand %p530_p0, %p524_p11 }
  0x22   :  { %534 = shalt.err (!%p531_p1)
}
  0x23   :  { %59 = dma.hbm_to_vmem [thread:$0]  %s771_s3, 2048, %s669_s21, [#allocation9], %s633_s30, %s633_s30, %s634_s6  }
  0x24   :  { %s635_s18 = smov [#allocation2]   ;;  %s636_s20 = smov [#allocation7]  }
  0x25   :  { %s19_s19 = sshll.u32 %s635_s18, 4  ;;  %s44_s22 = sshll.u32 %s636_s20, 4  ;;  %s20_s19 = int_to_ptr.vmem [resolvable:$true] %s19_s19  ;;  %s45_s22 = int_to_ptr.vmem [resolvable:$true] %s44_s22 }
  0x26   :  { %s535_s25 = scalar_lea.hbm %s768_s0, 512 }
  0x27   :  { %p536_p2 = scmp.ne.s32.totalorder %s768_s0, %s535_s25  ;;  %p539_p3 = scmp.lt.u32.totalorder %s535_s25, %s768_s0 }
  0x29   :  { %p541_p4 = pnand %p539_p3, %p536_p2 }
  0x2b   :  { %544 = shalt.err (!%p541_p4)
}
  0x2c   :  { %s545_s3 = scalar_lea.vmem %s20_s19, 512  ;;  %p550_p6 = scmp.lt.s32.totalorder %s20_s19, %s20_s19 }
  0x2d   :  { %p546_p5 = scmp.ne.s32.totalorder %s20_s19, %s545_s3  ;;  %p551_p7 = scmp.lt.s32.totalorder %s545_s3, %s545_s3 }
  0x2f   :  { %p552_p8 = por %p551_p7, %p550_p6 }
  0x31   :  { %p553_p9 = pnand %p552_p8, %p546_p5 }
  0x33   :  { %556 = shalt.err (!%p553_p9)
}
  0x34   :  { %25 = dma.hbm_to_vmem [thread:$0]  %s768_s0, 512, %s20_s19, [#allocation3], %s633_s30, %s633_s30, %s634_s6  }
  0x35   :  { %s557_s10 = scalar_lea.hbm %s770_s2, 16 }
  0x36   :  { %p558_p10 = scmp.ne.s32.totalorder %s770_s2, %s557_s10  ;;  %p561_p11 = scmp.lt.u32.totalorder %s557_s10, %s770_s2 }
  0x38   :  { %p563_p12 = pnand %p561_p11, %p558_p10 }
  0x3a   :  { %566 = shalt.err (!%p563_p12)
}
  0x3b   :  { %s567_s15 = scalar_lea.vmem %s45_s22, 16  ;;  %s571_s16 = scalar_lea.vmem %s45_s22, 32 }
  0x3c   :  { %p568_p13 = scmp.ne.s32.totalorder %s45_s22, %s567_s15  ;;  %p572_p0 = scmp.lt.s32.totalorder %s45_s22, %s45_s22 }
  0x3d   :  { %p573_p1 = scmp.lt.s32.totalorder %s571_s16, %s567_s15 }
  0x3f   :  { %p574_p2 = por %p573_p1, %p572_p0 }
  0x41   :  { %p575_p3 = pnand %p574_p2, %p568_p13 }
  0x43   :  { %578 = shalt.err (!%p575_p3)
}
  0x44   :  { %47 = dma.hbm_to_vmem [thread:$0]  %s770_s2, 16, %s45_s22, [#allocation6]  }
  0x45   :  { %s637_s17 = smov [#allocation10]   ;;  %s579_s23 = scalar_lea.hbm %s772_s4, 16 }
  0x46   :  { %s66_s18 = sshll.u32 %s637_s17, 4  ;;  %p580_p4 = scmp.ne.s32.totalorder %s772_s4, %s579_s23  ;;  %s67_s18 = int_to_ptr.vmem [resolvable:$true] %s66_s18 }
  0x47   :  { %p583_p5 = scmp.lt.u32.totalorder %s579_s23, %s772_s4 }
  0x49   :  { %p585_p6 = pnand %p583_p5, %p580_p4 }
  0x4b   :  { %588 = shalt.err (!%p585_p6)
}
  0x4c   :  { %s589_s28 = scalar_lea.vmem %s67_s18, 16  ;;  %s593_s2 = scalar_lea.vmem %s67_s18, 32 }
  0x4d   :  { %p590_p7 = scmp.ne.s32.totalorder %s67_s18, %s589_s28  ;;  %p594_p8 = scmp.lt.s32.totalorder %s67_s18, %s67_s18 }
  0x4e   :  { %p595_p9 = scmp.lt.s32.totalorder %s593_s2, %s589_s28 }
  0x50   :  { %p596_p10 = por %p595_p9, %p594_p8 }
  0x52   :  { %p597_p11 = pnand %p596_p10, %p590_p7 }
  0x54   :  { %600 = shalt.err (!%p597_p11)
}
  0x55   :  { %69 = dma.hbm_to_vmem [thread:$0]  %s772_s4, 16, %s67_s18, [#allocation9]  }
  0x56   :  { %623 = dma.done.wait [#allocation3], 512  }
  0x57   :  { %624 = vsyncadd [#allocation3], 4294966784 }
  0x58   :  { %625 = dma.done.wait [#allocation6], 528  }
  0x59   :  { %626 = vsyncadd [#allocation6], 4294966768 }
  0x5a   :  { %627 = dma.done.wait [#allocation9], 2064  }
  0x5b   :  { %628 = vsyncadd [#allocation9], 4294965232  ;;  %vm100_vm0 = vcmask 261120   ;;  %v89_v0 = vld [vmem:[#allocation5] sm:$0xff]  ;;  %v90_v1 = vld [vmem:[#allocation5 + $0x8] sm:$0xff]  ;;  %s638_s4 = smov [#allocation11]  }
  0x5c   :  { %v91_v2 = vld [vmem:[#allocation5 + $0x10] sm:$0xff]  ;;  %v435_v3 = vpack.c.bf16 %v90_v1, %v89_v0  ;;  %v92_v4 = vld [vmem:[#allocation5 + $0x18] sm:$0xff]  ;;  %v85_v5 = vld [vmem:[#allocation2] sm:$0xff]  ;;  %s335_s3 = sshll.u32 %s638_s4, 4  ;;  %s336_s3 = int_to_ptr.vmem [resolvable:$true] %s335_s3 }
  0x5d   :  { %v439_v6 = vpack.c.bf16 %v92_v4, %v91_v2  ;;  %391 = vmatprep.mubr.msk.f32.mxu0 %vm100_vm0, %v85_v5  ;;  %v218_v7 = vld [vmem:[#allocation8] sm:$0xff]  ;;  %v219_v8 = vld [vmem:[#allocation8 + $0x8] sm:$0xff]  ;;  %v220_v9 = vld [vmem:[#allocation8 + $0x10] sm:$0xff]  ;;  %s601_s21 = scalar_lea.vmem %s336_s3, 512  ;;  %p606_p13 = scmp.lt.s32.totalorder %s336_s3, %s336_s3 }
  0x5e   :  { %436 = vmatprep.subr.bf16.mxu0 %v435_v3  ;;  %v221_v10 = vld [vmem:[#allocation8 + $0x18] sm:$0xff]  ;;  %v443_v11 = vpack.c.bf16 %v219_v8, %v218_v7  ;;  %v222_v13 = vld [vmem:[#allocation8 + $0x20] sm:$0xff]  ;;  %v223_v14 = vld [vmem:[#allocation8 + $0x28] sm:$0xff]  ;;  %p602_p12 = scmp.ne.s32.totalorder %s336_s3, %s601_s21  ;;  %p607_p0 = scmp.lt.s32.totalorder %s601_s21, %s601_s21 }
  0x5f   :  { %438 = vmatpush3.bf16.msra.mxu0 %v435_v3  ;;  %v447_v12 = vpack.c.bf16 %v221_v10, %v220_v9  ;;  %v86_v15 = vld [vmem:[#allocation2 + $0x8] sm:$0xff]  ;;  %v451_v16 = vpack.c.bf16 %v223_v14, %v222_v13  ;;  %v87_v17 = vld [vmem:[#allocation2 + $0x10] sm:$0xff]  ;;  %v88_v18 = vld [vmem:[#allocation2 + $0x18] sm:$0xff] }
  0x60   :  { %440 = vmatprep.subr.bf16.mxu0 %v439_v6  ;;  %444 = vmatprep.subr.bf16.mxu1 %v443_v11  ;;  %v224_v19 = vld [vmem:[#allocation8 + $0x30] sm:$0xff]  ;;  %v225_v20 = vld [vmem:[#allocation8 + $0x38] sm:$0xff]  ;;  %v226_v22 = vld [vmem:[#allocation8 + $0x40] sm:$0xff]  ;;  %p608_p1 = por %p607_p0, %p606_p13 }
  0x61   :  { %446 = vmatpush3.bf16.msra.mxu1 %v443_v11  ;;  %v455_v21 = vpack.c.bf16 %v225_v20, %v224_v19  ;;  %v227_v23 = vld [vmem:[#allocation8 + $0x48] sm:$0xff]  ;;  %v228_v25 = vld [vmem:[#allocation8 + $0x50] sm:$0xff]  ;;  %v229_v26 = vld [vmem:[#allocation8 + $0x58] sm:$0xff] }
  0x62   :  { %448 = vmatprep.subr.bf16.mxu1 %v447_v12  ;;  %v459_v24 = vpack.c.bf16 %v227_v23, %v226_v22  ;;  %v463_v27 = vpack.c.bf16 %v229_v26, %v228_v25  ;;  %v230_v28 = vld [vmem:[#allocation8 + $0x60] sm:$0xff]  ;;  %v231_v29 = vld [vmem:[#allocation8 + $0x68] sm:$0xff]  ;;  %v232_v31 = vld [vmem:[#allocation8 + $0x70] sm:$0xff]  ;;  %p609_p2 = pnand %p608_p1, %p602_p12 }
  0x63   :  { %442 = vmatpush3.bf16.msra.mxu0 %v439_v6  ;;  %v467_v30 = vpack.c.bf16 %v231_v29, %v230_v28  ;;  %v233_v32 = vld [vmem:[#allocation8 + $0x78] sm:$0xff]  ;;  %v354_v63 = vld [vmem:[#allocation10] ss:$0 sm:$0xff] }
  0x64   :  { %v471_v33 = vpack.c.bf16 %v233_v32, %v232_v31  ;;  %v349_v34 = vld [vmem:[#allocation7] ss:$0 sm:$0xff] }
  0x65   :  { %450 = vmatpush3.bf16.msra.mxu1 %v447_v12 }
  0x66   :  { %392 = vmatmul.mubr.msk.f32.vlgmr.msra.gmra.mrb[0].mxu0 %vm100_vm0, %v86_v15  ;;  %452 = vmatprep.subr.bf16.mxu1 %v451_v16 }
  0x67   :  { %394 = vmatprep.mubr.msk.f32.mxu0 %vm100_vm0, %v87_v17 }
  0x69   :  { %454 = vmatpush3.bf16.msra.mxu1 %v451_v16 }
  0x6a   :  { %395 = vmatmul.mubr.msk.f32.gmra.mrb[2].mxu0 %vm100_vm0, %v88_v18  ;;  %456 = vmatprep.subr.bf16.mxu1 %v455_v21 }
  0x6d   :  { %458 = vmatpush3.bf16.msra.mxu1 %v455_v21 }
  0x6e   :  { %460 = vmatprep.subr.bf16.mxu1 %v459_v24 }
  0x71   :  { %462 = vmatpush3.bf16.msra.mxu1 %v459_v24 }
  0x72   :  { %464 = vmatprep.subr.bf16.mxu1 %v463_v27 }
  0x75   :  { %466 = vmatpush3.bf16.msra.mxu1 %v463_v27 }
  0x76   :  { %468 = vmatprep.subr.bf16.mxu1 %v467_v30 }
  0x79   :  { %470 = vmatpush3.bf16.msra.mxu1 %v467_v30 }
  0x7a   :  { %472 = vmatprep.subr.bf16.mxu1 %v471_v33 }
  0x7d   :  { %474 = vmatpush3.bf16.msra.mxu1 %v471_v33 }
 0x139   :  { %v393_v35 = vpop.f32.mrb[0].mxu0 }
 0x13a   :  { %v185_v36 = vadd.f32 %v393_v35, %v349_v34  ;;  %v179_v37 = vpop.f32.mrb[1].mxu0 }
 0x13b   :  { %v180_v38 = vadd.f32 %v349_v34, %v179_v37 }
 0x13c   :  { %v203_v39 = vmul.f32 0.70710677, %v185_v36  ;;  %v199_v52 = vmul.f32 0.5, %v185_v36 }
 0x13d   :  { %v202_v40 = vmul.f32 0.70710677, %v180_v38  ;;  %v396_v41 = vpop.f32.mrb[2].mxu0  ;;  %v198_v50 = vmul.f32 0.5, %v180_v38 }
 0x13e   :  { %483 = verf.f32 %v203_v39  ;;  %v195_v42 = vadd.f32 %v396_v41, %v349_v34  ;;  %v189_v43 = vpop.f32.mrb[3].mxu0 }
 0x13f   :  { %485 = verf.f32 %v202_v40  ;;  %v190_v44 = vadd.f32 %v349_v34, %v189_v43 }
 0x140   :  { %v205_v45 = vmul.f32 0.70710677, %v195_v42  ;;  %v201_v60 = vmul.f32 0.5, %v195_v42 }
 0x141   :  { %v204_v46 = vmul.f32 0.70710677, %v190_v44  ;;  %v200_v58 = vmul.f32 0.5, %v190_v44 }
 0x142   :  { %487 = verf.f32 %v205_v45 }
 0x143   :  { %489 = verf.f32 %v204_v46 }
 0x148   :  { %v484_v47 = vpop.eup %483 }
 0x149   :  { %v486_v48 = vpop.eup %485  ;;  %v211_v49 = vadd.f32 1.0, %v484_v47 }
 0x14a   :  { %v210_v51 = vadd.f32 1.0, %v486_v48 }
 0x14b   :  { %v215_v57 = vmul.f32 %v211_v49, %v199_v52 }
 0x14c   :  { %v488_v53 = vpop.eup %487  ;;  %v214_v54 = vmul.f32 %v210_v51, %v198_v50 }
 0x14d   :  { %v490_v55 = vpop.eup %489  ;;  %v213_v56 = vadd.f32 1.0, %v488_v53 }
 0x14e   :  { %v212_v59 = vadd.f32 1.0, %v490_v55  ;;  %429 = vmatprep.mubr.f32.mxu1 %v214_v54 }
 0x14f   :  { %430 = vmatmul.mubr.f32.vlgmr.msra.gmra.mrb[0].mxu1 %v215_v57  ;;  %v217_v62 = vmul.f32 %v213_v56, %v201_v60 }
 0x150   :  { %v216_v61 = vmul.f32 %v212_v59, %v200_v58 }
 0x152   :  { %432 = vmatprep.mubr.f32.mxu1 %v216_v61 }
 0x153   :  { %433 = vmatmul.mubr.f32.gmra.mrb[2].mxu1 %v217_v62 }
 0x222   :  { %v431_v0 = vpop.f32.mrb[0].mxu1 }
 0x223   :  { %v313_v1 = vadd.f32 %v431_v0, %v354_v63  ;;  %v307_v2 = vpop.f32.mrb[1].mxu1 }
 0x224   :  { %v308_v3 = vadd.f32 %v354_v63, %v307_v2 }
 0x225   :  { %327 = vst.msk [vmem:[#allocation11 + $0x8] sm:$0xff] %vm100_vm0, %v313_v1 }
 0x226   :  { %326 = vst.msk [vmem:[#allocation11] sm:$0xff] %vm100_vm0, %v308_v3  ;;  %v434_v4 = vpop.f32.mrb[2].mxu1 }
 0x227   :  { %v323_v5 = vadd.f32 %v434_v4, %v354_v63  ;;  %v317_v6 = vpop.f32.mrb[3].mxu1 }
 0x228   :  { %v318_v7 = vadd.f32 %v354_v63, %v317_v6 }
 0x229   :  { %329 = vst.msk [vmem:[#allocation11 + $0x18] sm:$0xff] %vm100_vm0, %v323_v5 }
 0x22a   :  { %328 = vst.msk [vmem:[#allocation11 + $0x10] sm:$0xff] %vm100_vm0, %v318_v7 }
 0x22b   :  { %612 = shalt.err (!%p609_p2)
}
 0x22c   :  { %s613_s9 = scalar_lea.hbm %s773_s5, 512 }
 0x22d   :  { %p614_p3 = scmp.ne.s32.totalorder %s773_s5, %s613_s9  ;;  %p617_p4 = scmp.lt.u32.totalorder %s613_s9, %s773_s5 }
 0x22f   :  { %p619_p5 = pnand %p617_p4, %p614_p3 }
 0x231   :  { %622 = shalt.err (!%p619_p5)
}
 0x232   :  { %341 = dma.vmem_to_hbm [thread:$0]  %s336_s3, 512, %s773_s5, [#allocation4], %s633_s30, %s633_s30, %s634_s6  }
 0x233   :  { %629 = dma.done.wait [#allocation4], 512  }
 0x234   :  { %630 = vsyncadd [#allocation4], 4294966784 }
 0x235   :  { %345 = vsyncpa [#allocation3], 1 }
 0x236   :  { %346 = vsyncpa [#allocation6], 1 }
 0x237   :  { %347 = vsyncpa [#allocation9], 1 }
 0x238   :  { %348 = vsyncpa [#allocation4], 1 }

</bundles_post_ra>
